<compile_context>
chip_gen: v7x
topology: tpu7x:2x2x1
jax: 0.10.0
libtpu: 0.0.40
codegen_flags: <defaults>
</compile_context>

<pallas_src>
import jax
import jax.numpy as jnp
from jax.experimental import pallas as pl
from jax.experimental.pallas import tpu as pltpu


# --------------------------- fused Pallas kernel --------------------------- #
def _make_fused_kernel(N, H, W, Cin, Cmid, Cout, kH):
    """Builds the fused conv1+ReLU+conv2+ReLU kernel (all dims static)."""
    assert kH == 3, "kernel assumes 3x3 convs with SAME padding"
    M = N * H
    WC1 = W * Cin     # lanes per kh tap of conv1 lhs (64)
    WC2 = W * Cmid    # lanes per kh tap of conv2 lhs / conv1 out lanes (128)
    WCo = W * Cout    # output lanes (128)

    def _stage_im2row(lhs_ref, src, wc):
        # src: (M, wc) value, batches stacked along rows.
        # lhs_ref: (M, 3*wc) scratch; lane block `kh` holds src shifted by
        # (kh-1) rows (SAME zero padding along H).  Halo rows are fixed up
        # afterwards, so every scratch element is (re)written each call.
        lhs_ref[pl.ds(1, M - 1), 0:wc] = src[0:M - 1, :]           # kh = 0
        lhs_ref[:, wc:2 * wc] = src                                # kh = 1
        lhs_ref[pl.ds(0, M - 1), 2 * wc:3 * wc] = src[1:M, :]      # kh = 2
        zero_row = jnp.zeros((1, wc), lhs_ref.dtype)
        for n in range(N):                                         # N=2, unrolled
            lhs_ref[pl.ds(n * H, 1), 0:wc] = zero_row              # top halo
            lhs_ref[pl.ds(n * H + H - 1, 1), 2 * wc:3 * wc] = zero_row  # bottom

    def kernel(x_ref, w1_ref, b1_ref, w2_ref, b2_ref, o_ref,
               lhs1_ref, lhs2_ref):
        # x_ref:    (M, WC1)       f32  packed NHWC input, batch folded into M
        # w1_ref:   (3*WC1, WC2)   bf16 kh-concatenated banded conv1 weights
        # b1_ref:   (1, WC2)       f32
        # w2_ref:   (3*WC2, WCo)   bf16 kh-concatenated banded conv2 weights
        # b2_ref:   (1, WCo)       f32
        # o_ref:    (M, WCo)       f32  packed NHWC output (lane dense)
        # lhs1_ref: (M, 3*WC1)     f32  VMEM scratch
        # lhs2_ref: (M, 3*WC2)     f32  VMEM scratch

        # ---- conv1: one matmul, bias + ReLU epilogue in f32 ----
        _stage_im2row(lhs1_ref, x_ref[...], WC1)
        acc1 = jnp.dot(lhs1_ref[...].astype(jnp.bfloat16), w1_ref[...],
                       preferred_element_type=jnp.float32)
        h = jnp.maximum(acc1 + b1_ref[...], 0.0)          # (M, WC2), stays in VMEM

        # ---- conv2: intermediate h never leaves the kernel ----
        _stage_im2row(lhs2_ref, h, WC2)
        acc2 = jnp.dot(lhs2_ref[...].astype(jnp.bfloat16), w2_ref[...],
                       preferred_element_type=jnp.float32)
        o_ref[...] = jnp.maximum(acc2 + b2_ref[...], 0.0).astype(o_ref.dtype)

    return kernel


# ------------------------- parameter preprocessing ------------------------- #
def _banded_weights(w_hwio, W):
    """HWIO (kH,kW,Ci,Co) -> (kH, W*Ci, W*Co) banded matrices over UNPADDED W:
    A[kh, w_in*Ci+ci, w_out*Co+co] = w_hwio[kh, kw, ci, co] where
    w_in = w_out + kw - 1 (boundary kw taps omitted; zero padding == zero)."""
    kH, kW, Ci, Co = w_hwio.shape
    kw = jnp.arange(kW)[:, None, None]
    wi = jnp.arange(W)[None, :, None]       # input column
    wo = jnp.arange(W)[None, None, :]       # output column
    band = (wi == wo + kw - 1).astype(w_hwio.dtype)        # (kW, W, W)
    a = jnp.einsum("kiw,hkco->hicwo", band, w_hwio)        # (kH, W, Ci, W, Co)
    return a.reshape(kH, W * Ci, W * Co)


def prepare_kernel_params(params, W):
    """One-time repack of canonical conv params into the fused-kernel layout."""
    def one(p):
        w, b = p["w"], p["b"]
        cout = w.shape[-1]
        a = _banded_weights(w, W)                           # (kH, W*Ci, W*Co)
        kH, K, Nl = a.shape
        return {
            # kh taps concatenated along the contraction axis, bf16 for MXU/DMA.
            "a": a.reshape(kH * K, Nl).astype(jnp.bfloat16),
            # bias tiled per (w, co); kept f32 for the f32 epilogue.
            "b": jnp.tile(b, W).reshape(1, W * cout).astype(jnp.float32),
        }
    return {"net1": one(params["net1"]), "net2": one(params["net2"])}


def init_params(key, cin=4, mid=8, cout=8, k=3):
    k1, k2, k3, k4 = jax.random.split(key, 4)
    scale1 = 1.0 / jnp.sqrt(cin * k * k)
    scale2 = 1.0 / jnp.sqrt(mid * k * k)
    return {
        "net1": {
            "w": jax.random.normal(k1, (k, k, cin, mid), jnp.float32) * scale1,
            "b": jax.random.normal(k2, (mid,), jnp.float32) * scale1,
        },
        "net2": {
            "w": jax.random.normal(k3, (k, k, mid, cout), jnp.float32) * scale2,
            "b": jax.random.normal(k4, (cout,), jnp.float32) * scale2,
        },
    }


# --------------------------------- forward --------------------------------- #
@jax.jit
def two_nets_forward(kparams, x_nchw):
    """TwoNets.forward: net2(net1(x)). I/O is NCHW like PyTorch."""
    w1, b1 = kparams["net1"]["a"], kparams["net1"]["b"]
    w2, b2 = kparams["net2"]["a"], kparams["net2"]["b"]

    N, Cin, H, W = x_nchw.shape
    Cmid = b1.shape[-1] // W
    Cout = b2.shape[-1] // W
    kH = w1.shape[0] // (W * Cin)
    M = N * H

    # NCHW -> packed rows (N*H, W*Cin): one tiny fused XLA copy (8 KB).
    x_packed = jnp.transpose(x_nchw, (0, 2, 3, 1)).reshape(M, W * Cin)

    kernel = _make_fused_kernel(N, H, W, Cin, Cmid, Cout, kH)
    out_packed = pl.pallas_call(
        kernel,
        out_shape=jax.ShapeDtypeStruct((M, W * Cout), jnp.float32),
        scratch_shapes=[
            pltpu.VMEM((M, kH * W * Cin), jnp.float32),
            pltpu.VMEM((M, kH * W * Cmid), jnp.float32),
        ],
    )(x_packed, w1, b1, w2, b2)

    # packed rows -> NCHW: one tiny XLA copy (16 KB).
    return jnp.transpose(out_packed.reshape(N, H, W, Cout), (0, 3, 1, 2))


# -------------------------------- reference -------------------------------- #
def _ref_forward(params, x_nchw):
    x = jnp.transpose(x_nchw, (0, 2, 3, 1))

    def conv(x, w, b):
        y = jax.lax.conv_general_dilated(
            x, w, window_strides=(1, 1), padding="SAME",
            dimension_numbers=("NHWC", "HWIO", "NHWC"))
        return jax.nn.relu(y + b)

    h = conv(x, params["net1"]["w"], params["net1"]["b"])
    y = conv(h, params["net2"]["w"], params["net2"]["b"])
    return jnp.transpose(y, (0, 3, 1, 2))


if __name__ == "__main__":
    key = jax.random.PRNGKey(0)
    kp, kx = jax.random.split(key)

    params = init_params(kp, cin=4, mid=8, cout=8)
    x = jax.random.normal(kx, (2, 4, 16, 16), jnp.float32)   # NCHW, like PyTorch

    # One-time weight repack (outside the per-call forward path).
    kparams = prepare_kernel_params(params, W=x.shape[-1])

    out = jax.block_until_ready(two_nets_forward(kparams, x))
    ref = jax.block_until_ready(_ref_forward(params, x))

    assert out.shape == (2, 8, 16, 16), out.shape
    # bf16 MXU operands (f32 accumulation) vs f32 reference -> loosened tol.
    assert jnp.allclose(out, ref, atol=5e-2, rtol=5e-2), float(
        jnp.max(jnp.abs(out - ref)))

    print("KERNEL_OK")
</pallas_src>

<mosaic_0001>
module attributes {stable_mosaic.version = 11 : i64} {
  func.func @kernel(%arg0: memref<32x64xf32, #tpu.memory_space<vmem>>, %arg1: memref<192x128xbf16, #tpu.memory_space<vmem>>, %arg2: memref<1x128xf32, #tpu.memory_space<vmem>>, %arg3: memref<384x128xbf16, #tpu.memory_space<vmem>>, %arg4: memref<1x128xf32, #tpu.memory_space<vmem>>, %arg5: memref<32x128xf32, #tpu.memory_space<vmem>>, %arg6: memref<32x192xf32, #tpu.memory_space<vmem>>, %arg7: memref<32x384xf32, #tpu.memory_space<vmem>>) attributes {dimension_semantics = [], scalar_prefetch = 0 : i64, scratch_operands = 2 : i64, tpu.core_type = #tpu.core_type<tc>} {
    %c0 = arith.constant 0 : index
    %c0_0 = arith.constant 0 : index
    %0 = vector.load %arg0[%c0, %c0_0] : memref<32x64xf32, #tpu.memory_space<vmem>>, vector<32x64xf32>
    %1 = vector.extract_strided_slice %0 {offsets = [0, 0], sizes = [31, 64], strides = [1, 1]} : vector<32x64xf32> to vector<31x64xf32>
    %c1 = arith.constant 1 : index
    %c0_1 = arith.constant 0 : index
    %2 = vector.load %arg6[%c1, %c0_1] : memref<32x192xf32, #tpu.memory_space<vmem>>, vector<31x64xf32>
    tpu.vector_store %arg6[%c1, %c0_1], %1 {strides = array<i32>} : memref<32x192xf32, #tpu.memory_space<vmem>>, vector<31x64xf32>,
    %c0_2 = arith.constant 0 : index
    %c64 = arith.constant 64 : index
    %3 = vector.load %arg6[%c0_2, %c64] : memref<32x192xf32, #tpu.memory_space<vmem>>, vector<32x64xf32>
    tpu.vector_store %arg6[%c0_2, %c64], %0 {strides = array<i32>} : memref<32x192xf32, #tpu.memory_space<vmem>>, vector<32x64xf32>,
    %4 = vector.extract_strided_slice %0 {offsets = [1, 0], sizes = [31, 64], strides = [1, 1]} : vector<32x64xf32> to vector<31x64xf32>
    %c0_3 = arith.constant 0 : index
    %c128 = arith.constant 128 : index
    %5 = vector.load %arg6[%c0_3, %c128] : memref<32x192xf32, #tpu.memory_space<vmem>>, vector<31x64xf32>
    tpu.vector_store %arg6[%c0_3, %c128], %4 {strides = array<i32>} : memref<32x192xf32, #tpu.memory_space<vmem>>, vector<31x64xf32>,
    %cst = arith.constant 0.000000e+00 : f32
    %6 = vector.broadcast %cst : f32 to vector<1x64xf32>
    %c0_4 = arith.constant 0 : index
    %c0_5 = arith.constant 0 : index
    %7 = vector.load %arg6[%c0_4, %c0_5] : memref<32x192xf32, #tpu.memory_space<vmem>>, vector<1x64xf32>
    tpu.vector_store %arg6[%c0_4, %c0_5], %6 {strides = array<i32>} : memref<32x192xf32, #tpu.memory_space<vmem>>, vector<1x64xf32>,
    %c15 = arith.constant 15 : index
    %c128_6 = arith.constant 128 : index
    %8 = vector.load %arg6[%c15, %c128_6] : memref<32x192xf32, #tpu.memory_space<vmem>>, vector<1x64xf32>
    tpu.vector_store %arg6[%c15, %c128_6], %6 {strides = array<i32>} : memref<32x192xf32, #tpu.memory_space<vmem>>, vector<1x64xf32>,
    %c16 = arith.constant 16 : index
    %c0_7 = arith.constant 0 : index
    %9 = vector.load %arg6[%c16, %c0_7] : memref<32x192xf32, #tpu.memory_space<vmem>>, vector<1x64xf32>
    tpu.vector_store %arg6[%c16, %c0_7], %6 {strides = array<i32>} : memref<32x192xf32, #tpu.memory_space<vmem>>, vector<1x64xf32>,
    %c31 = arith.constant 31 : index
    %c128_8 = arith.constant 128 : index
    %10 = vector.load %arg6[%c31, %c128_8] : memref<32x192xf32, #tpu.memory_space<vmem>>, vector<1x64xf32>
    tpu.vector_store %arg6[%c31, %c128_8], %6 {strides = array<i32>} : memref<32x192xf32, #tpu.memory_space<vmem>>, vector<1x64xf32>,
    %c0_9 = arith.constant 0 : index
    %c0_10 = arith.constant 0 : index
    %11 = vector.load %arg6[%c0_9, %c0_10] : memref<32x192xf32, #tpu.memory_space<vmem>>, vector<32x192xf32>
    %12 = arith.truncf %11 : vector<32x192xf32> to vector<32x192xbf16>
    %c0_11 = arith.constant 0 : index
    %c0_12 = arith.constant 0 : index
    %13 = vector.load %arg1[%c0_11, %c0_12] : memref<192x128xbf16, #tpu.memory_space<vmem>>, vector<192x128xbf16>
    %cst_13 = arith.constant dense<0.000000e+00> : vector<32x128xf32>
    %14 = tpu.matmul %12, %13, %cst_13 {dimension_numbers = #tpu.dot_dimension_numbers<[1], [0], [0], [1], [0, 0, 1, 1], [], []>} : vector<32x192xbf16>, vector<192x128xbf16>, vector<32x128xf32> -> vector<32x128xf32>
    %c0_14 = arith.constant 0 : index
    %c0_15 = arith.constant 0 : index
    %15 = vector.load %arg2[%c0_14, %c0_15] : memref<1x128xf32, #tpu.memory_space<vmem>>, vector<1x128xf32>
    %16 = vector.broadcast %15 : vector<1x128xf32> to vector<32x128xf32>
    %17 = arith.addf %14, %16 : vector<32x128xf32>
    %cst_16 = arith.constant 0.000000e+00 : f32
    %18 = vector.broadcast %cst_16 : f32 to vector<32x128xf32>
    %19 = arith.maximumf %17, %18 : vector<32x128xf32>
    %20 = vector.extract_strided_slice %19 {offsets = [0, 0], sizes = [31, 128], strides = [1, 1]} : vector<32x128xf32> to vector<31x128xf32>
    %c1_17 = arith.constant 1 : index
    %c0_18 = arith.constant 0 : index
    %21 = vector.load %arg7[%c1_17, %c0_18] : memref<32x384xf32, #tpu.memory_space<vmem>>, vector<31x128xf32>
    tpu.vector_store %arg7[%c1_17, %c0_18], %20 {strides = array<i32>} : memref<32x384xf32, #tpu.memory_space<vmem>>, vector<31x128xf32>,
    %c0_19 = arith.constant 0 : index
    %c128_20 = arith.constant 128 : index
    %22 = vector.load %arg7[%c0_19, %c128_20] : memref<32x384xf32, #tpu.memory_space<vmem>>, vector<32x128xf32>
    tpu.vector_store %arg7[%c0_19, %c128_20], %19 {strides = array<i32>} : memref<32x384xf32, #tpu.memory_space<vmem>>, vector<32x128xf32>,
    %23 = vector.extract_strided_slice %19 {offsets = [1, 0], sizes = [31, 128], strides = [1, 1]} : vector<32x128xf32> to vector<31x128xf32>
    %c0_21 = arith.constant 0 : index
    %c256 = arith.constant 256 : index
    %24 = vector.load %arg7[%c0_21, %c256] : memref<32x384xf32, #tpu.memory_space<vmem>>, vector<31x128xf32>
    tpu.vector_store %arg7[%c0_21, %c256], %23 {strides = array<i32>} : memref<32x384xf32, #tpu.memory_space<vmem>>, vector<31x128xf32>,
    %cst_22 = arith.constant 0.000000e+00 : f32
    %25 = vector.broadcast %cst_22 : f32 to vector<1x128xf32>
    %c0_23 = arith.constant 0 : index
    %c0_24 = arith.constant 0 : index
    %26 = vector.load %arg7[%c0_23, %c0_24] : memref<32x384xf32, #tpu.memory_space<vmem>>, vector<1x128xf32>
    tpu.vector_store %arg7[%c0_23, %c0_24], %25 {strides = array<i32>} : memref<32x384xf32, #tpu.memory_space<vmem>>, vector<1x128xf32>,
    %c15_25 = arith.constant 15 : index
    %c256_26 = arith.constant 256 : index
    %27 = vector.load %arg7[%c15_25, %c256_26] : memref<32x384xf32, #tpu.memory_space<vmem>>, vector<1x128xf32>
    tpu.vector_store %arg7[%c15_25, %c256_26], %25 {strides = array<i32>} : memref<32x384xf32, #tpu.memory_space<vmem>>, vector<1x128xf32>,
    %c16_27 = arith.constant 16 : index
    %c0_28 = arith.constant 0 : index
    %28 = vector.load %arg7[%c16_27, %c0_28] : memref<32x384xf32, #tpu.memory_space<vmem>>, vector<1x128xf32>
    tpu.vector_store %arg7[%c16_27, %c0_28], %25 {strides = array<i32>} : memref<32x384xf32, #tpu.memory_space<vmem>>, vector<1x128xf32>,
    %c31_29 = arith.constant 31 : index
    %c256_30 = arith.constant 256 : index
    %29 = vector.load %arg7[%c31_29, %c256_30] : memref<32x384xf32, #tpu.memory_space<vmem>>, vector<1x128xf32>
    tpu.vector_store %arg7[%c31_29, %c256_30], %25 {strides = array<i32>} : memref<32x384xf32, #tpu.memory_space<vmem>>, vector<1x128xf32>,
    %c0_31 = arith.constant 0 : index
    %c0_32 = arith.constant 0 : index
    %30 = vector.load %arg7[%c0_31, %c0_32] : memref<32x384xf32, #tpu.memory_space<vmem>>, vector<32x384xf32>
    %31 = arith.truncf %30 : vector<32x384xf32> to vector<32x384xbf16>
    %c0_33 = arith.constant 0 : index
    %c0_34 = arith.constant 0 : index
    %32 = vector.load %arg3[%c0_33, %c0_34] : memref<384x128xbf16, #tpu.memory_space<vmem>>, vector<384x128xbf16>
    %cst_35 = arith.constant dense<0.000000e+00> : vector<32x128xf32>
    %33 = tpu.matmul %31, %32, %cst_35 {dimension_numbers = #tpu.dot_dimension_numbers<[1], [0], [0], [1], [0, 0, 1, 1], [], []>} : vector<32x384xbf16>, vector<384x128xbf16>, vector<32x128xf32> -> vector<32x128xf32>
    %c0_36 = arith.constant 0 : index
    %c0_37 = arith.constant 0 : index
    %34 = vector.load %arg4[%c0_36, %c0_37] : memref<1x128xf32, #tpu.memory_space<vmem>>, vector<1x128xf32>
    %35 = vector.broadcast %34 : vector<1x128xf32> to vector<32x128xf32>
    %36 = arith.addf %33, %35 : vector<32x128xf32>
    %cst_38 = arith.constant 0.000000e+00 : f32
    %37 = vector.broadcast %cst_38 : f32 to vector<32x128xf32>
    %38 = arith.maximumf %36, %37 : vector<32x128xf32>
    %c0_39 = arith.constant 0 : index
    %c0_40 = arith.constant 0 : index
    %39 = vector.load %arg5[%c0_39, %c0_40] : memref<32x128xf32, #tpu.memory_space<vmem>>, vector<32x128xf32>
    tpu.vector_store %arg5[%c0_39, %c0_40], %38 {strides = array<i32>} : memref<32x128xf32, #tpu.memory_space<vmem>>, vector<32x128xf32>,
    return
  }
}

</mosaic_0001>

<bundles_post_ra>
// kernel: two_nets_forward.1
= control target key start
LH: loop header
LB: loop body
LE: loop exit
PB: predicated region body
PF: predicated region fallthrough
CT: control target
= control target key end

     0   :  { %vm43_vm0 = vcmask 523264   ;;  %vm64_vm1 = vcmask 1046528   ;;  %vm79_vm2 = vcmask 522240   ;;  %v766_v3 = vmov 0   ;;  %s767_s24 = smov 64   ;;  %s983_s0 = inlined_call_operand.vmem [shape: f32[32,64], index: 0, kind: input, shape index: {}]   ;;  %s984_s1 = inlined_call_operand.vmem [shape: bf16[192,128], index: 1, kind: input, shape index: {}]   ;;  %s985_s3 = inlined_call_operand.vmem [shape: bf16[384,128], index: 3, kind: input, shape index: {}]   ;;  %s986_s2 = inlined_call_operand.vmem [shape: f32[1,128], index: 2, kind: input, shape index: {}]   ;;  %s987_s4 = inlined_call_operand.vmem [shape: f32[1,128], index: 4, kind: input, shape index: {}]   ;;  %s988_s5 = inlined_call_operand.vmem [shape: f32[32,128], index: 5, kind: output, shape index: {}]  }
   0x1   :  { %v21_v0 = vld [vmem:[%s983_s0] sm:$0xff]  ;;  %v22_v1 = vld [vmem:[%s983_s0 + $0x8] sm:$0xff]  ;;  %v23_v2 = vld [vmem:[%s983_s0 + $0x10] sm:$0xff]  ;;  %207 = vmatprep.subr.bf16.mxu0 %v766_v3  ;;  %vm41_vm3 = vcmask 523265   ;;  %vm81_vm4 = vcmask 516096   ;;  %v768_v18 = vmov 0.0  }
   0x2   :  { %47 = vrot.lane.b32.xlu0 %v21_v0, %s767_s24  ;;  %v30_v4 = vrot.slane %v21_v0, 7  ;;  %v65_v5 = vrot.slane %v21_v0, 1  ;;  %v31_v6 = vrot.slane %v22_v1, 7  ;;  %v66_v7 = vrot.slane %v22_v1, 1  ;;  %51 = vrot.lane.b32.xlu1 %v23_v2, %s767_s24  ;;  %v24_v8 = vld [vmem:[%s983_s0 + $0x18] sm:$0xff]  ;;  %v730_v9 = vld [vmem:[%s984_s1] sm:$0xff]  }
   0x3   :  { %v33_v10 = vrot.slane %v23_v2, 7  ;;  %v68_v11 = vrot.slane %v23_v2, 1  ;;  %v35_v12 = vrot.slane %v24_v8, 7  ;;  %v70_v13 = vrot.slane %v24_v8, 1  ;;  %208 = vmatpush1.bf16.msra.mxu0 %v730_v9  ;;  %v731_v17 = vld [vmem:[%s984_s1 + $0x8] sm:$0xff]   ;;  %v732_v22 = vld [vmem:[%s984_s1 + $0x10] sm:$0xff]  }
   0x4   :  { %v67_v14 = vsel %vm64_vm1, %v65_v5, %v66_v7  ;;  %42 = vst.msk [vmem:[#allocation2] sm:$0xfe] %vm41_vm3, %v30_v4  ;;  %209 = vmatprep.subr.bf16.mxu0 %v766_v3  ;;  %298 = vst [vmem:[#allocation3] sm:$0x1] %v768_v18  ;;  %vm29_vm5 = vcmask 1040384   ;;  %v733_v23 = vld [vmem:[%s984_s1 + $0x18] sm:$0xff]  }
   0x5   :  { %76 = vst.msk [vmem:[#allocation2 + $0x8] sm:$0xff] %vm43_vm0, %v67_v14  ;;  %v69_v15 = vsel %vm64_vm1, %v66_v7, %v68_v11  ;;  %v71_v16 = vsel %vm64_vm1, %v68_v11, %v70_v13  ;;  %301 = vst [vmem:[#allocation3 + $0x5f] sm:$0x1] %v768_v18  ;;  %v32_v19 = vsel %vm29_vm5, %v30_v4, %v31_v6  ;;  %v734_v25 = vld [vmem:[%s984_s1 + $0x20] sm:$0xff]   ;;  %v735_v29 = vld [vmem:[%s984_s1 + $0x28] sm:$0xff]   ;;  %vm59_vm6 = vcmask 1048064  }
   0x6   :  { %80 = vst.msk [vmem:[#allocation2 + $0x38] sm:$0x7f] %vm79_vm2, %v70_v13  ;;  %49 = vrot.lane.b32.xlu0 %v22_v1, %s767_s24  ;;  %53 = vrot.lane.b32.xlu1 %v24_v8, %s767_s24  ;;  %v34_v20 = vsel %vm29_vm5, %v31_v6, %v33_v10  ;;  %v36_v21 = vsel %vm29_vm5, %v33_v10, %v35_v12  ;;  %v742_v28 = vld [vmem:[%s985_s3 + $0x40] sm:$0xff]   ;;  %v744_v31 = vld [vmem:[%s985_s3 + $0x48] sm:$0xff]  }
   0x7   :  { %77 = vst.msk [vmem:[#allocation2 + $0x18] sm:$0xff] %vm43_vm0, %v69_v15  ;;  %78 = vst.msk [vmem:[#allocation2 + $0x28] sm:$0xff] %vm43_vm0, %v71_v16  ;;  %210 = vmatpush1.bf16.msra.mxu0 %v731_v17  ;;  %v743_v30 = vld [vmem:[%s985_s3] sm:$0xff]   ;;  %669 = vmatprep.subr.bf16.mxu1 %v742_v28  ;;  %v745_v32 = vld [vmem:[%s985_s3 + $0x8] sm:$0xff]  }
   0x8   :  { %85 = vst.msk [vmem:[#allocation2 + $0x3f] sm:$0x1] %vm81_vm4, %v768_v18  ;;  %83 = vst.msk [vmem:[#allocation2 + $0x1f] sm:$0x1] %vm81_vm4, %v768_v18  ;;  %211 = vmatprep.subr.bf16.mxu0 %v766_v3  ;;  %670 = vmatpush3.bf16.msra.mxu1 %v743_v30  ;;  %v746_v33 = vld [vmem:[%s985_s3 + $0x50] sm:$0xff]   ;;  %v748_v36 = vld [vmem:[%s985_s3 + $0x58] sm:$0xff]  }
   0x9   :  { %44 = vst.msk [vmem:[#allocation2 + $0x10] sm:$0xff] %vm43_vm0, %v32_v19  ;;  %45 = vst.msk [vmem:[#allocation2 + $0x20] sm:$0xff] %vm43_vm0, %v34_v20  ;;  %671 = vmatprep.subr.bf16.mxu1 %v744_v31  ;;  %v736_v34 = vld [vmem:[%s984_s1 + $0x30] sm:$0xff]   ;;  %v737_v37 = vld [vmem:[%s984_s1 + $0x38] sm:$0xff]  }
   0xa   :  { %46 = vst.msk [vmem:[#allocation2 + $0x30] sm:$0xff] %vm43_vm0, %v36_v21  ;;  %v747_v35 = vld [vmem:[%s985_s3 + $0x10] sm:$0xff]   ;;  %v738_v38 = vld [vmem:[%s984_s1 + $0x40] sm:$0xff]   ;;  %v739_v39 = vld [vmem:[%s984_s1 + $0x48] sm:$0xff]  }
   0xb   :  { %212 = vmatpush1.bf16.msra.mxu0 %v732_v22  ;;  %v740_v40 = vld [vmem:[%s984_s1 + $0x50] sm:$0xff]   ;;  %v741_v41 = vld [vmem:[%s984_s1 + $0x58] sm:$0xff]   ;;  %v750_v56 = vld [vmem:[%s985_s3 + $0x60] sm:$0xff]  }
   0xc   :  { %213 = vmatprep.subr.bf16.mxu0 %v766_v3  ;;  %v87_v24 = vld [vmem:[#allocation2 + $0x8] sm:$0xff]  ;;  %672 = vmatpush3.bf16.msra.mxu1 %v745_v32  ;;  %v749_v55 = vld [vmem:[%s985_s3 + $0x18] sm:$0xff]   ;;  %v751_v57 = vld [vmem:[%s985_s3 + $0x20] sm:$0xff]  }
   0xd   :  { %673 = vmatprep.subr.bf16.mxu1 %v746_v33  ;;  %v752_v58 = vld [vmem:[%s985_s3 + $0x68] sm:$0xff]   ;;  %v754_v60 = vld [vmem:[%s985_s3 + $0x70] sm:$0xff]   ;;  %v756_v62 = vld [vmem:[%s985_s3 + $0x78] sm:$0xff]  }
   0xe   :  { %v91_v46 = vld [vmem:[#allocation2 + $0x28] sm:$0xff]  ;;  %v755_v61 = vld [vmem:[%s985_s3 + $0x30] sm:$0xff]   ;;  %v757_v63 = vld [vmem:[%s985_s3 + $0x38] sm:$0xff]  }
   0xf   :  { %214 = vmatpush1.bf16.msra.mxu0 %v733_v23  ;;  %v89_v26 = vld [vmem:[#allocation2 + $0x18] sm:$0xff]  ;;  %v753_v59 = vld [vmem:[%s985_s3 + $0x28] sm:$0xff]   ;;  %v758_v0 = vld [vmem:[%s985_s3 + $0x80] sm:$0xff]  }
  0x10   :  { %215 = vmatprep.subr.bf16.mxu0 %v766_v3  ;;  %v95_v27 = vpack.c.bf16 %v89_v26, %v87_v24  ;;  %674 = vmatpush3.bf16.msra.mxu1 %v747_v35  ;;  %v93_v47 = vld [vmem:[#allocation2 + $0x38] sm:$0xff]  ;;  %v629_v1 = vld [vmem:[%s986_s2] ss:$0 sm:$0xff] }
  0x11   :  { %675 = vmatprep.subr.bf16.mxu1 %v748_v36  ;;  %v97_v50 = vpack.c.bf16 %v93_v47, %v91_v46  ;;  %v765_v46 = vld [vmem:[%s985_s3 + $0xb8] sm:$0xff]  }
  0x12   :  { %642 = vmatprep.mubr.msk.bf16.mxu0 %vm43_vm0, %v95_v27 }
  0x13   :  { %216 = vmatpush1.bf16.msra.mxu0 %v734_v25 }
  0x14   :  { %217 = vmatprep.subr.bf16.mxu0 %v766_v3  ;;  %676 = vmatpush3.bf16.msra.mxu1 %v749_v55 }
  0x15   :  { %677 = vmatprep.subr.bf16.mxu1 %v750_v56 }
  0x17   :  { %218 = vmatpush1.bf16.msra.mxu0 %v735_v29 }
  0x18   :  { %219 = vmatprep.subr.bf16.mxu0 %v766_v3  ;;  %678 = vmatpush3.bf16.msra.mxu1 %v751_v57 }
  0x19   :  { %679 = vmatprep.subr.bf16.mxu1 %v752_v58 }
  0x1b   :  { %220 = vmatpush1.bf16.msra.mxu0 %v736_v34  ;;  %v759_v34 = vld [vmem:[%s985_s3 + $0x88] sm:$0xff]  }
  0x1c   :  { %221 = vmatprep.subr.bf16.mxu0 %v766_v3  ;;  %680 = vmatpush3.bf16.msra.mxu1 %v753_v59 }
  0x1d   :  { %681 = vmatprep.subr.bf16.mxu1 %v754_v60 }
  0x1f   :  { %222 = vmatpush1.bf16.msra.mxu0 %v737_v37 }
  0x20   :  { %223 = vmatprep.subr.bf16.mxu0 %v766_v3  ;;  %682 = vmatpush3.bf16.msra.mxu1 %v755_v61  ;;  %v644_v61 = vld [vmem:[%s987_s4] ss:$0 sm:$0xff] }
  0x21   :  { %683 = vmatprep.subr.bf16.mxu1 %v756_v62 }
  0x23   :  { %224 = vmatpush1.bf16.msra.mxu0 %v738_v38  ;;  %v760_v38 = vld [vmem:[%s985_s3 + $0x90] sm:$0xff]  }
  0x24   :  { %225 = vmatprep.subr.bf16.mxu0 %v766_v3  ;;  %684 = vmatpush3.bf16.msra.mxu1 %v757_v63 }
  0x25   :  { %707 = vmatprep.subr.bf16.mxu1 %v758_v0 }
  0x27   :  { %226 = vmatpush1.bf16.msra.mxu0 %v739_v39 }
  0x28   :  { %227 = vmatprep.subr.bf16.mxu0 %v766_v3 }
  0x2b   :  { %228 = vmatpush1.bf16.msra.mxu0 %v740_v40 }
  0x2c   :  { %229 = vmatprep.subr.bf16.mxu0 %v766_v3 }
  0x2f   :  { %230 = vmatpush1.bf16.msra.mxu0 %v741_v41 }
  0x74   :  { %v48_v42 = vpop.permute.xlu0 %47  ;;  %v52_v43 = vpop.permute.xlu1 %51 }
  0x75   :  { %60 = vst.msk [vmem:[#allocation2] sm:$0xff] %vm59_vm6, %v48_v42  ;;  %62 = vst.msk [vmem:[#allocation2 + $0x20] sm:$0xff] %vm59_vm6, %v52_v43  ;;  %v762_v43 = vld [vmem:[%s985_s3 + $0xa0] sm:$0xff]  }
  0x76   :  { %82 = vst.msk [vmem:[#allocation2] sm:$0x1] %vm81_vm4, %v768_v18  ;;  %84 = vst.msk [vmem:[#allocation2 + $0x20] sm:$0x1] %vm81_vm4, %v768_v18 }
  0x78   :  { %v50_v44 = vpop.permute.xlu0 %49  ;;  %v54_v45 = vpop.permute.xlu1 %53 }
  0x79   :  { %61 = vst.msk [vmem:[#allocation2 + $0x10] sm:$0xff] %vm59_vm6, %v50_v44  ;;  %63 = vst.msk [vmem:[#allocation2 + $0x30] sm:$0xff] %vm59_vm6, %v54_v45  ;;  %v763_v44 = vld [vmem:[%s985_s3 + $0xa8] sm:$0xff]   ;;  %v764_v45 = vld [vmem:[%s985_s3 + $0xb0] sm:$0xff]  }
  0x7d   :  { %v86_v48 = vld [vmem:[#allocation2] sm:$0xff] }
  0x7e   :  { %v90_v52 = vld [vmem:[#allocation2 + $0x20] sm:$0xff] }
  0x80   :  { %v88_v49 = vld [vmem:[#allocation2 + $0x10] sm:$0xff] }
  0x81   :  { %v94_v51 = vpack.c.bf16 %v88_v49, %v86_v48  ;;  %v92_v53 = vld [vmem:[#allocation2 + $0x30] sm:$0xff] }
  0x82   :  { %v96_v54 = vpack.c.bf16 %v92_v53, %v90_v52 }
  0x83   :  { %240 = vmatmul.mubr.bf16.vlgmr.msra.gmra.mrb[0].mxu0 %v94_v51 }
  0x84   :  { %643 = vmatprep.mubr.msk.bf16.mxu0 %vm43_vm0, %v97_v50 }
  0x8b   :  { %248 = vmatmul.mubr.bf16.gmra.mrb[4].mxu0 %v96_v54 }
 0x156   :  { %v241_v2 = vpop.f32.mrb[0].mxu0 }
 0x157   :  { %v242_v3 = vadd.f32 %v629_v1, %v241_v2  ;;  %v243_v4 = vpop.f32.mrb[1].mxu0 }
 0x158   :  { %v244_v5 = vpop.f32.mrb[2].mxu0 }
 0x159   :  { %v256_v6 = vmax.f32 %v242_v3, 0.0  ;;  %v245_v7 = vadd.f32 %v629_v1, %v244_v5  ;;  %v246_v8 = vpop.f32.mrb[3].mxu0 }
 0x15b   :  { %v264_v9 = vrot.slane %v256_v6, 7  ;;  %v257_v10 = vmax.f32 %v245_v7, 0.0  ;;  %v283_v11 = vrot.slane %v256_v6, 1 }
 0x15d   :  { %275 = vst [vmem:[#allocation3] sm:$0xfe] %v264_v9  ;;  %v265_v12 = vrot.slane %v257_v10, 7  ;;  %v284_v13 = vrot.slane %v257_v10, 1  ;;  %v315_v14 = vpack.c.bf16 %v257_v10, %v256_v6 }
 0x15e   :  { %v249_v15 = vpop.f32.mrb[4].mxu0 }
 0x15f   :  { %v266_v16 = vsel %vm29_vm5, %v264_v9, %v265_v12  ;;  %v285_v17 = vsel %vm64_vm1, %v283_v11, %v284_v13  ;;  %v250_v19 = vadd.f32 %v629_v1, %v249_v15  ;;  %v251_v20 = vpop.f32.mrb[5].mxu0  ;;  %551 = vmatprep.mubr.bf16.mxu1 %v315_v14 }
 0x160   :  { %v252_v21 = vpop.f32.mrb[6].mxu0 }
 0x161   :  { %v258_v22 = vmax.f32 %v250_v19, 0.0  ;;  %v253_v23 = vadd.f32 %v629_v1, %v252_v21  ;;  %v254_v24 = vpop.f32.mrb[7].mxu0 }
 0x163   :  { %v267_v25 = vrot.slane %v258_v22, 7  ;;  %v286_v26 = vrot.slane %v258_v22, 1  ;;  %v259_v27 = vmax.f32 %v253_v23, 0.0 }
 0x164   :  { %v302_v28 = vld [vmem:[#allocation3] sm:$0xff] }
 0x165   :  { %v268_v29 = vsel %vm29_vm5, %v265_v12, %v267_v25  ;;  %v287_v30 = vsel %vm64_vm1, %v284_v13, %v286_v26  ;;  %v269_v31 = vrot.slane %v259_v27, 7  ;;  %v288_v32 = vrot.slane %v259_v27, 1 }
 0x166   :  { %277 = vst [vmem:[#allocation3 + $0x30] sm:$0xff] %v268_v29  ;;  %295 = vst [vmem:[#allocation3 + $0x28] sm:$0xff] %v287_v30  ;;  %v314_v33 = vpack.c.bf16 %v266_v16, %v302_v28  ;;  %v318_v35 = vpack.c.bf16 %v259_v27, %v258_v22 }
 0x167   :  { %299 = vst [vmem:[#allocation3 + $0x2f] sm:$0x1] %v768_v18  ;;  %300 = vst [vmem:[#allocation3 + $0x30] sm:$0x1] %v768_v18  ;;  %v270_v36 = vsel %vm29_vm5, %v267_v25, %v269_v31  ;;  %v289_v37 = vsel %vm64_vm1, %v286_v26, %v288_v32  ;;  %v761_v18 = vld [vmem:[%s985_s3 + $0x98] sm:$0xff]  }
 0x168   :  { %297 = vst [vmem:[#allocation3 + $0x58] sm:$0x7f] %v288_v32  ;;  %552 = vmatmul.mubr.bf16.vlgmr.msra.gmra.mrb[0].mxu1 %v314_v33 }
 0x169   :  { %708 = vmatpush3.bf16.msra.mxu1 %v758_v0  ;;  %559 = vmatprep.mubr.bf16.mxu1 %v318_v35 }
 0x16a   :  { %709 = vmatprep.subr.bf16.mxu1 %v759_v34 }
 0x16d   :  { %710 = vmatpush3.bf16.msra.mxu1 %v759_v34 }
 0x16e   :  { %711 = vmatprep.subr.bf16.mxu1 %v760_v38  ;;  %v308_v39 = vld [vmem:[#allocation3 + $0x30] sm:$0xff]  ;;  %v307_v40 = vld [vmem:[#allocation3 + $0x28] sm:$0xff] }
 0x16f   :  { %v317_v41 = vpack.c.bf16 %v270_v36, %v308_v39  ;;  %v316_v42 = vpack.c.bf16 %v307_v40, %v285_v17  ;;  %v313_v47 = vld [vmem:[#allocation3 + $0x58] sm:$0xff] }
 0x170   :  { %v319_v48 = vpack.c.bf16 %v313_v47, %v289_v37 }
 0x171   :  { %560 = vmatmul.mubr.bf16.gmra.mrb[4].mxu1 %v317_v41 }
 0x172   :  { %712 = vmatpush3.bf16.msra.mxu1 %v760_v38  ;;  %723 = vmatprep.mubr.bf16.mxu1 %v316_v42 }
 0x173   :  { %713 = vmatprep.subr.bf16.mxu1 %v761_v18 }
 0x176   :  { %714 = vmatpush3.bf16.msra.mxu1 %v761_v18 }
 0x177   :  { %715 = vmatprep.subr.bf16.mxu1 %v762_v43 }
 0x17a   :  { %716 = vmatpush3.bf16.msra.mxu1 %v762_v43 }
 0x17b   :  { %717 = vmatprep.subr.bf16.mxu1 %v763_v44 }
 0x17e   :  { %718 = vmatpush3.bf16.msra.mxu1 %v763_v44 }
 0x17f   :  { %719 = vmatprep.subr.bf16.mxu1 %v764_v45 }
 0x182   :  { %720 = vmatpush3.bf16.msra.mxu1 %v764_v45 }
 0x183   :  { %721 = vmatprep.subr.bf16.mxu1 %v765_v46 }
 0x186   :  { %722 = vmatpush3.bf16.msra.mxu1 %v765_v46 }
 0x189   :  { %724 = vmatmul.mubr.bf16.vlgmr.msra.gmra.mrb[8].mxu1 %v319_v48 }
 0x23b   :  { %v685_v49 = vpop.f32.mrb[0].mxu1 }
 0x23c   :  { %v686_v50 = vpop.f32.mrb[1].mxu1 }
 0x23d   :  { %v687_v51 = vadd.f32 %v686_v50, %v685_v49  ;;  %v688_v52 = vpop.f32.mrb[2].mxu1 }
 0x23e   :  { %v689_v53 = vpop.f32.mrb[3].mxu1 }
 0x23f   :  { %v690_v54 = vadd.f32 %v689_v53, %v688_v52  ;;  %v554_v0 = vadd.f32 %v687_v51, %v644_v61 }
 0x241   :  { %v557_v6 = vadd.f32 %v690_v54, %v644_v61 }
 0x244   :  { %v691_v55 = vpop.f32.mrb[4].mxu1 }
 0x245   :  { %v692_v56 = vpop.f32.mrb[5].mxu1 }
 0x246   :  { %v693_v57 = vadd.f32 %v692_v56, %v691_v55  ;;  %v694_v58 = vpop.f32.mrb[6].mxu1 }
 0x247   :  { %v695_v59 = vpop.f32.mrb[7].mxu1 }
 0x248   :  { %v696_v60 = vadd.f32 %v695_v59, %v694_v58  ;;  %v562_v62 = vadd.f32 %v693_v57, %v644_v61 }
 0x24a   :  { %v565_v3 = vadd.f32 %v696_v60, %v644_v61 }
 0x25c   :  { %v725_v63 = vpop.f32.mrb[8].mxu1 }
 0x25d   :  { %v611_v1 = vadd.f32 %v725_v63, %v562_v62  ;;  %v602_v2 = vpop.f32.mrb[9].mxu1 }
 0x25e   :  { %v603_v4 = vadd.f32 %v602_v2, %v554_v0  ;;  %v726_v5 = vpop.f32.mrb[10].mxu1 }
 0x25f   :  { %v619_v7 = vmax.f32 %v611_v1, 0.0  ;;  %v614_v8 = vadd.f32 %v726_v5, %v565_v3  ;;  %v605_v9 = vpop.f32.mrb[11].mxu1 }
 0x260   :  { %v617_v10 = vmax.f32 %v603_v4, 0.0  ;;  %v606_v11 = vadd.f32 %v605_v9, %v557_v6 }
 0x261   :  { %623 = vst [vmem:[%s988_s5 + $0x10] sm:$0xff] %v619_v7  ;;  %v620_v12 = vmax.f32 %v614_v8, 0.0 }
 0x262   :  { %621 = vst [vmem:[%s988_s5] sm:$0xff] %v617_v10  ;;  %v618_v13 = vmax.f32 %v606_v11, 0.0 }
 0x263   :  { %624 = vst [vmem:[%s988_s5 + $0x18] sm:$0xff] %v620_v12 }
 0x264   :  { %622 = vst [vmem:[%s988_s5 + $0x8] sm:$0xff] %v618_v13 }

</bundles_post_ra>
